<compile_context>
chip_gen: v5e
topology: v5e:2x2
jax: 0.10.0
libtpu: 0.0.40
codegen_flags: <defaults>
</compile_context>

<pallas_src>
import jax
import jax.numpy as jnp
from jax.experimental import pallas as pl
from jax.experimental.pallas import tpu as pltpu


def _round_up(n, m):
    return ((n + m - 1) // m) * m


def _pad2d(a, rows, cols):
    r, c = a.shape
    return jnp.pad(a, ((0, rows - r), (0, cols - c)))


def mlp_kernel(x_ref, w1_ref, b1_ref, w2_ref, b2_ref, w3_ref, b3_ref,
               w4_ref, b4_ref, o_ref):
    # One batch tile per grid step; weights/biases are VMEM-resident across
    # steps (constant index_map). Accumulation stays f32 on the MXU.
    dt = w1_ref.dtype
    h = jnp.dot(x_ref[...].astype(dt), w1_ref[...],
                preferred_element_type=jnp.float32) + b1_ref[...]
    h = jnp.maximum(h, 0.0)
    h = jnp.dot(h.astype(dt), w2_ref[...],
                preferred_element_type=jnp.float32) + b2_ref[...]
    h = jnp.maximum(h, 0.0)
    h = jnp.dot(h.astype(dt), w3_ref[...],
                preferred_element_type=jnp.float32) + b3_ref[...]
    h = jnp.maximum(h, 0.0)
    out = jnp.dot(h.astype(dt), w4_ref[...],
                  preferred_element_type=jnp.float32) + b4_ref[...]
    o_ref[...] = out.astype(o_ref.dtype)


def prepare_params(params, input_neurons, param_dtype=jnp.float32):
    """One-time parameter prep (hoisted out of the forward):
    zero-pad hidden dims to 128-lane multiples and cast to param_dtype.
    The first layer's K stays at the real input width and the last layer's N
    stays at the real output width. Zero padding is exact through x@W+b+ReLU."""
    (w1, b1), (w2, b2), (w3, b3), (w4, b4) = params
    h1, h2, h3, outputs = w1.shape[1], w2.shape[1], w3.shape[1], w4.shape[1]
    d_h1 = _round_up(h1, 128)
    d_h2 = _round_up(h2, 128)
    d_h3 = _round_up(h3, 128)

    w1_p = _pad2d(w1, input_neurons, d_h1).astype(param_dtype)
    b1_p = _pad2d(b1.reshape(1, -1), 1, d_h1).astype(param_dtype)
    w2_p = _pad2d(w2, d_h1, d_h2).astype(param_dtype)
    b2_p = _pad2d(b2.reshape(1, -1), 1, d_h2).astype(param_dtype)
    w3_p = _pad2d(w3, d_h2, d_h3).astype(param_dtype)
    b3_p = _pad2d(b3.reshape(1, -1), 1, d_h3).astype(param_dtype)
    w4_p = _pad2d(w4, d_h3, outputs).astype(param_dtype)
    b4_p = b4.reshape(1, -1).astype(param_dtype)
    return (w1_p, b1_p, w2_p, b2_p, w3_p, b3_p, w4_p, b4_p)


def softmax_module_forward(x, prepped, input_neurons, *,
                           batch_tile=512, x_dtype=None):
    """Mirrors Softmax.forward: x.view(-1, inputNeurons) -> 4 Linear layers."""
    x2d = x.reshape(-1, input_neurons)
    batch = x2d.shape[0]
    w1_p, b1_p, w2_p, b2_p, w3_p, b3_p, w4_p, b4_p = prepped
    outputs = w4_p.shape[1]

    # Pad batch only to a sublane multiple; the grid handles the tail via cdiv.
    b_pad = _round_up(max(batch, 1), 8)
    # Keep >= 2 grid steps when the batch allows (both v7x TCs get work).
    half = _round_up(-(-b_pad // 2), 8)
    tm = max(8, min(batch_tile, half))
    grid = (pl.cdiv(b_pad, tm),)

    if x_dtype is None:
        x_dtype = x2d.dtype
    x_p = x2d.astype(x_dtype)
    if b_pad != batch:
        x_p = jnp.pad(x_p, ((0, b_pad - batch), (0, 0)))

    def resident(arr):
        # Full-array block, constant index -> DMA'd once, stays VMEM-resident.
        return pl.BlockSpec(arr.shape, lambda i: (0, 0))

    # Advisory cost model so XLA schedules the wrapper ops around the call.
    h1, h2, h3 = w1_p.shape[1], w2_p.shape[1], w3_p.shape[1]
    flops = 2 * b_pad * (input_neurons * h1 + h1 * h2 + h2 * h3 + h3 * outputs)
    bytes_accessed = int(x_p.size * x_p.dtype.itemsize
                         + b_pad * outputs * 4
                         + sum(a.size * a.dtype.itemsize for a in prepped))

    out_p = pl.pallas_call(
        mlp_kernel,
        out_shape=jax.ShapeDtypeStruct((b_pad, outputs), jnp.float32),
        grid=grid,
        in_specs=[
            # Streamed activations, UNPADDED lane dim (full-extent last dim).
            pl.BlockSpec((tm, input_neurons), lambda i: (i, 0)),
            resident(w1_p), resident(b1_p),
            resident(w2_p), resident(b2_p),
            resident(w3_p), resident(b3_p),
            resident(w4_p), resident(b4_p),
        ],
        # Real-width output store (10 lanes): 12.8x less HBM write traffic.
        out_specs=pl.BlockSpec((tm, outputs), lambda i: (i, 0)),
        compiler_params=pltpu.CompilerParams(
            dimension_semantics=("parallel",),
        ),
        cost_estimate=pl.CostEstimate(flops=flops, transcendentals=0,
                                      bytes_accessed=bytes_accessed),
    )(x_p, w1_p, b1_p, w2_p, b2_p, w3_p, b3_p, w4_p, b4_p)

    if b_pad != batch:
        out_p = out_p[:batch]
    return out_p.astype(x2d.dtype)


def init_linear_params(key, fan_in, fan_out):
    """Deterministic init matching nn.Linear's U(-1/sqrt(fan_in), 1/sqrt(fan_in))."""
    kw, kb = jax.random.split(key)
    bound = 1.0 / jnp.sqrt(jnp.float32(fan_in))
    # weight stored transposed relative to PyTorch: (in, out), so kernel does x @ W + b
    w = jax.random.uniform(kw, (fan_in, fan_out), jnp.float32, -bound, bound)
    b = jax.random.uniform(kb, (1, fan_out), jnp.float32, -bound, bound)
    return w, b


if __name__ == "__main__":
    input_neurons = 32   # inputNeurons
    hlayer1 = 64         # hlayer1
    outputs = 10         # outputs

    root = jax.random.PRNGKey(0)
    k_x, k1, k2, k3, k4 = jax.random.split(root, 5)

    params = (
        init_linear_params(k1, input_neurons, hlayer1),
        init_linear_params(k2, hlayer1, 300),
        init_linear_params(k3, 300, 50),
        init_linear_params(k4, 50, outputs),
    )

    # One-time parameter prep (padding + dtype), hoisted out of the forward.
    prepped = prepare_params(params, input_neurons, param_dtype=jnp.float32)

    # Input: batch=2, features=32 (forward's view(-1, inputNeurons) keeps it (2, 32)).
    x = jax.random.normal(k_x, (2, input_neurons), jnp.float32)

    out = softmax_module_forward(x, prepped, input_neurons)
    out = jax.block_until_ready(out)

    # Sanity check against a pure-JAX reference of the same math (raw logits,
    # no softmax — matching the PyTorch module's forward).
    h = x.reshape(-1, input_neurons)
    for i, (w, b) in enumerate(params):
        h = h @ w + b
        if i < 3:
            h = jnp.maximum(h, 0.0)
    assert out.shape == (2, outputs)
    assert jnp.allclose(out, h, atol=1e-5, rtol=1e-5)

    print("KERNEL_OK")
</pallas_src>

<mosaic_0001>
module attributes {stable_mosaic.version = 11 : i64} {
  func.func @mlp_kernel(%arg0: i32, %arg1: memref<8x32xf32, #tpu.memory_space<vmem>>, %arg2: memref<32x128xf32, #tpu.memory_space<vmem>>, %arg3: memref<1x128xf32, #tpu.memory_space<vmem>>, %arg4: memref<128x384xf32, #tpu.memory_space<vmem>>, %arg5: memref<1x384xf32, #tpu.memory_space<vmem>>, %arg6: memref<384x128xf32, #tpu.memory_space<vmem>>, %arg7: memref<1x128xf32, #tpu.memory_space<vmem>>, %arg8: memref<128x10xf32, #tpu.memory_space<vmem>>, %arg9: memref<1x10xf32, #tpu.memory_space<vmem>>, %arg10: memref<8x10xf32, #tpu.memory_space<vmem>>) attributes {dimension_semantics = [#tpu.dimension_semantics<parallel>], iteration_bounds = array<i64: 1>, scalar_prefetch = 0 : i64, scratch_operands = 0 : i64, tpu.core_type = #tpu.core_type<tc>, window_params = [{transform_indices = @transform_0, window_bounds = array<i64: 8, 32>}, {pipeline_mode = #tpu.pipeline_mode<synchronous>, transform_indices = @transform_1, window_bounds = array<i64: 32, 128>}, {pipeline_mode = #tpu.pipeline_mode<synchronous>, transform_indices = @transform_2, window_bounds = array<i64: 1, 128>}, {pipeline_mode = #tpu.pipeline_mode<synchronous>, transform_indices = @transform_3, window_bounds = array<i64: 128, 384>}, {pipeline_mode = #tpu.pipeline_mode<synchronous>, transform_indices = @transform_4, window_bounds = array<i64: 1, 384>}, {pipeline_mode = #tpu.pipeline_mode<synchronous>, transform_indices = @transform_5, window_bounds = array<i64: 384, 128>}, {pipeline_mode = #tpu.pipeline_mode<synchronous>, transform_indices = @transform_6, window_bounds = array<i64: 1, 128>}, {pipeline_mode = #tpu.pipeline_mode<synchronous>, transform_indices = @transform_7, window_bounds = array<i64: 128, 10>}, {pipeline_mode = #tpu.pipeline_mode<synchronous>, transform_indices = @transform_8, window_bounds = array<i64: 1, 10>}, {transform_indices = @transform_9, window_bounds = array<i64: 8, 10>}]} {
    %c0 = arith.constant 0 : index
    %c0_0 = arith.constant 0 : index
    %0 = vector.load %arg1[%c0, %c0_0] : memref<8x32xf32, #tpu.memory_space<vmem>>, vector<8x32xf32>
    %c0_1 = arith.constant 0 : index
    %c0_2 = arith.constant 0 : index
    %1 = vector.load %arg2[%c0_1, %c0_2] : memref<32x128xf32, #tpu.memory_space<vmem>>, vector<32x128xf32>
    %cst = arith.constant dense<0.000000e+00> : vector<8x128xf32>
    %2 = tpu.matmul %0, %1, %cst {dimension_numbers = #tpu.dot_dimension_numbers<[1], [0], [0], [1], [0, 0, 1, 1], [], []>} : vector<8x32xf32>, vector<32x128xf32>, vector<8x128xf32> -> vector<8x128xf32>
    %c0_3 = arith.constant 0 : index
    %c0_4 = arith.constant 0 : index
    %3 = vector.load %arg3[%c0_3, %c0_4] : memref<1x128xf32, #tpu.memory_space<vmem>>, vector<1x128xf32>
    %4 = vector.broadcast %3 : vector<1x128xf32> to vector<8x128xf32>
    %5 = arith.addf %2, %4 : vector<8x128xf32>
    %cst_5 = arith.constant 0.000000e+00 : f32
    %6 = vector.broadcast %cst_5 : f32 to vector<8x128xf32>
    %7 = arith.maximumf %5, %6 : vector<8x128xf32>
    %c0_6 = arith.constant 0 : index
    %c0_7 = arith.constant 0 : index
    %8 = vector.load %arg4[%c0_6, %c0_7] : memref<128x384xf32, #tpu.memory_space<vmem>>, vector<128x384xf32>
    %cst_8 = arith.constant dense<0.000000e+00> : vector<8x384xf32>
    %9 = tpu.matmul %7, %8, %cst_8 {dimension_numbers = #tpu.dot_dimension_numbers<[1], [0], [0], [1], [0, 0, 1, 1], [], []>} : vector<8x128xf32>, vector<128x384xf32>, vector<8x384xf32> -> vector<8x384xf32>
    %c0_9 = arith.constant 0 : index
    %c0_10 = arith.constant 0 : index
    %10 = vector.load %arg5[%c0_9, %c0_10] : memref<1x384xf32, #tpu.memory_space<vmem>>, vector<1x384xf32>
    %11 = vector.broadcast %10 : vector<1x384xf32> to vector<8x384xf32>
    %12 = arith.addf %9, %11 : vector<8x384xf32>
    %cst_11 = arith.constant 0.000000e+00 : f32
    %13 = vector.broadcast %cst_11 : f32 to vector<8x384xf32>
    %14 = arith.maximumf %12, %13 : vector<8x384xf32>
    %c0_12 = arith.constant 0 : index
    %c0_13 = arith.constant 0 : index
    %15 = vector.load %arg6[%c0_12, %c0_13] : memref<384x128xf32, #tpu.memory_space<vmem>>, vector<384x128xf32>
    %cst_14 = arith.constant dense<0.000000e+00> : vector<8x128xf32>
    %16 = tpu.matmul %14, %15, %cst_14 {dimension_numbers = #tpu.dot_dimension_numbers<[1], [0], [0], [1], [0, 0, 1, 1], [], []>} : vector<8x384xf32>, vector<384x128xf32>, vector<8x128xf32> -> vector<8x128xf32>
    %c0_15 = arith.constant 0 : index
    %c0_16 = arith.constant 0 : index
    %17 = vector.load %arg7[%c0_15, %c0_16] : memref<1x128xf32, #tpu.memory_space<vmem>>, vector<1x128xf32>
    %18 = vector.broadcast %17 : vector<1x128xf32> to vector<8x128xf32>
    %19 = arith.addf %16, %18 : vector<8x128xf32>
    %cst_17 = arith.constant 0.000000e+00 : f32
    %20 = vector.broadcast %cst_17 : f32 to vector<8x128xf32>
    %21 = arith.maximumf %19, %20 : vector<8x128xf32>
    %c0_18 = arith.constant 0 : index
    %c0_19 = arith.constant 0 : index
    %22 = vector.load %arg8[%c0_18, %c0_19] : memref<128x10xf32, #tpu.memory_space<vmem>>, vector<128x10xf32>
    %cst_20 = arith.constant dense<0.000000e+00> : vector<8x10xf32>
    %23 = tpu.matmul %21, %22, %cst_20 {dimension_numbers = #tpu.dot_dimension_numbers<[1], [0], [0], [1], [0, 0, 1, 1], [], []>} : vector<8x128xf32>, vector<128x10xf32>, vector<8x10xf32> -> vector<8x10xf32>
    %c0_21 = arith.constant 0 : index
    %c0_22 = arith.constant 0 : index
    %24 = vector.load %arg9[%c0_21, %c0_22] : memref<1x10xf32, #tpu.memory_space<vmem>>, vector<1x10xf32>
    %25 = vector.broadcast %24 : vector<1x10xf32> to vector<8x10xf32>
    %26 = arith.addf %23, %25 : vector<8x10xf32>
    %c0_23 = arith.constant 0 : index
    %c0_24 = arith.constant 0 : index
    %27 = vector.load %arg10[%c0_23, %c0_24] : memref<8x10xf32, #tpu.memory_space<vmem>>, vector<8x10xf32>
    tpu.vector_store %arg10[%c0_23, %c0_24], %26 {strides = array<i32>} : memref<8x10xf32, #tpu.memory_space<vmem>>, vector<8x10xf32>,
    return
  }
  func.func @transform_0(%arg0: i32) -> (i32, i32) {
    %c0_i32 = arith.constant 0 : i32
    %c0_i32_0 = arith.constant 0 : i32
    return %arg0, %c0_i32 : i32, i32
  }
  func.func @transform_1(%arg0: i32) -> (i32, i32) {
    %c0_i32 = arith.constant 0 : i32
    %c0_i32_0 = arith.constant 0 : i32
    %c0_i32_1 = arith.constant 0 : i32
    return %c0_i32, %c0_i32_0 : i32, i32
  }
  func.func @transform_2(%arg0: i32) -> (i32, i32) {
    %c0_i32 = arith.constant 0 : i32
    %c0_i32_0 = arith.constant 0 : i32
    %c0_i32_1 = arith.constant 0 : i32
    return %c0_i32, %c0_i32_0 : i32, i32
  }
  func.func @transform_3(%arg0: i32) -> (i32, i32) {
    %c0_i32 = arith.constant 0 : i32
    %c0_i32_0 = arith.constant 0 : i32
    %c0_i32_1 = arith.constant 0 : i32
    return %c0_i32, %c0_i32_0 : i32, i32
  }
  func.func @transform_4(%arg0: i32) -> (i32, i32) {
    %c0_i32 = arith.constant 0 : i32
    %c0_i32_0 = arith.constant 0 : i32
    %c0_i32_1 = arith.constant 0 : i32
    return %c0_i32, %c0_i32_0 : i32, i32
  }
  func.func @transform_5(%arg0: i32) -> (i32, i32) {
    %c0_i32 = arith.constant 0 : i32
    %c0_i32_0 = arith.constant 0 : i32
    %c0_i32_1 = arith.constant 0 : i32
    return %c0_i32, %c0_i32_0 : i32, i32
  }
  func.func @transform_6(%arg0: i32) -> (i32, i32) {
    %c0_i32 = arith.constant 0 : i32
    %c0_i32_0 = arith.constant 0 : i32
    %c0_i32_1 = arith.constant 0 : i32
    return %c0_i32, %c0_i32_0 : i32, i32
  }
  func.func @transform_7(%arg0: i32) -> (i32, i32) {
    %c0_i32 = arith.constant 0 : i32
    %c0_i32_0 = arith.constant 0 : i32
    %c0_i32_1 = arith.constant 0 : i32
    return %c0_i32, %c0_i32_0 : i32, i32
  }
  func.func @transform_8(%arg0: i32) -> (i32, i32) {
    %c0_i32 = arith.constant 0 : i32
    %c0_i32_0 = arith.constant 0 : i32
    %c0_i32_1 = arith.constant 0 : i32
    return %c0_i32, %c0_i32_0 : i32, i32
  }
  func.func @transform_9(%arg0: i32) -> (i32, i32) {
    %c0_i32 = arith.constant 0 : i32
    %c0_i32_0 = arith.constant 0 : i32
    return %arg0, %c0_i32 : i32, i32
  }
}

</mosaic_0001>

<bundles_post_ra>
// kernel: tpu_custom_call.1
= control target key start
LH: loop header
LB: loop body
LE: loop exit
PB: predicated region body
PF: predicated region fallthrough
CT: control target
= control target key end

     0   :  { %14 = vsyncpa [#allocation3], 0  ;;  %s621_s0 = inlined_call_operand.vmem [shape: f32[8,32], index: 0, kind: input, shape index: {}]   ;;  %s622_s1 = inlined_call_operand.vmem [shape: f32[32,128], index: 1, kind: input, shape index: {}]   ;;  %s623_s2 = inlined_call_operand.vmem [shape: f32[1,128], index: 2, kind: input, shape index: {}]   ;;  %s624_s3 = inlined_call_operand.hbm [shape: f32[128,384], index: 3, kind: input, shape index: {}]   ;;  %s625_s4 = inlined_call_operand.vmem [shape: f32[1,384], index: 4, kind: input, shape index: {}]   ;;  %s626_s5 = inlined_call_operand.hbm [shape: f32[384,128], index: 5, kind: input, shape index: {}]   ;;  %s627_s6 = inlined_call_operand.vmem [shape: f32[1,128], index: 6, kind: input, shape index: {}]   ;;  %s628_s7 = inlined_call_operand.vmem [shape: f32[128,10], index: 7, kind: input, shape index: {}]   ;;  %s629_s8 = inlined_call_operand.vmem [shape: f32[1,10], index: 8, kind: input, shape index: {}]   ;;  %s630_s9 = inlined_call_operand.hbm [shape: f32[8,10], index: 9, kind: output, shape index: {}]  }
   0x1   :  { %15 = vsyncpa [#allocation6], 0 }
   0x2   :  { %16 = vsyncpa [#allocation4], 0  ;;  %s27_s11 = sshll.u32 %s624_s3, 4  ;;  %s480_s12 = smov [#allocation2]   ;;  %s28_s11 = int_to_ptr.hbm [resolvable:$true] %s27_s11 }
   0x3   :  { %s29_s13 = sshll.u32 %s480_s12, 4  ;;  %s42_s16 = sshll.u32 %s626_s5, 4  ;;  %s30_s13 = int_to_ptr.vmem [resolvable:$true] %s29_s13  ;;  %s43_s16 = int_to_ptr.hbm [resolvable:$true] %s42_s16 }
   0x4   :  { %s481_s17 = smov 384   ;;  %s482_s18 = smov 24  }
   0x5   :  { %35 = dma.hbm_to_vmem [thread:$0]  %s28_s11, 6144, %s30_s13, [#allocation3], %s481_s17, %s481_s17, %s482_s18  }
   0x6   :  { %s483_s19 = smov [#allocation5]   ;;  %s484_s21 = smov 128  }
   0x7   :  { %s44_s20 = sshll.u32 %s483_s19, 4  ;;  %s485_s22 = smov 8   ;;  %s45_s20 = int_to_ptr.vmem [resolvable:$true] %s44_s20 }
   0x8   :  { %50 = dma.hbm_to_vmem [thread:$0]  %s43_s16, 6144, %s45_s20, [#allocation6], %s484_s21, %s484_s21, %s485_s22  }
   0x9   :  { %474 = dma.done.wait [#allocation3], 6144  }
   0xa   :  { %475 = vsyncadd [#allocation3], 4294961152 }
   0xb   :  { %476 = dma.done.wait [#allocation6], 6144  }
   0xc   :  { %477 = vsyncadd [#allocation6], 4294961152  ;;  %v69_v0 = vld [vmem:[%s622_s1 + $0x18] sm:$0xff]  ;;  %v68_v1 = vld [vmem:[%s622_s1 + $0x10] sm:$0xff]  ;;  %vm74_vm0 = vcmask 261120   ;;  %s486_s20 = smov [#allocation7]  }
   0xd   :  { %90 = vmatpush.msra.mxu0 %v69_v0  ;;  %v67_v2 = vld [vmem:[%s622_s1 + $0x8] sm:$0xff]  ;;  %v145_v4 = vld [vmem:[#allocation2 + $0x170] sm:$0xff]  ;;  %v146_v5 = vld [vmem:[#allocation2 + $0x178] sm:$0xff]  ;;  %s378_s21 = sshll.u32 %s486_s20, 4  ;;  %s380_s3 = sshll.u32 %s630_s9, 4  ;;  %vm371_vm1 = vcmask 80896   ;;  %s379_s21 = int_to_ptr.vmem [resolvable:$true] %s378_s21  ;;  %s381_s3 = int_to_ptr.hbm [resolvable:$true] %s380_s3 }
   0xe   :  { %v144_v3 = vld [vmem:[#allocation2 + $0x168] sm:$0xff]  ;;  %v141_v6 = vld [vmem:[#allocation2 + $0x150] sm:$0xff]  ;;  %175 = vmatpush.msra.mxu2 %v145_v4  ;;  %v142_v7 = vld [vmem:[#allocation2 + $0x158] sm:$0xff]  ;;  %195 = vmatpush.msra.mxu3 %v146_v5 }
   0xf   :  { %155 = vmatpush.msra.mxu1 %v144_v3  ;;  %91 = vmatpush.msra.mxu0 %v68_v1  ;;  %v143_v8 = vld [vmem:[#allocation2 + $0x160] sm:$0xff]  ;;  %v138_v9 = vld [vmem:[#allocation2 + $0x138] sm:$0xff]  ;;  %v140_v13 = vld [vmem:[#allocation2 + $0x148] sm:$0xff] }
  0x10   :  { %v66_v10 = vld [vmem:[%s622_s1] sm:$0xff]  ;;  %176 = vmatpush.msra.mxu2 %v142_v7  ;;  %196 = vmatpush.msra.mxu3 %v143_v8  ;;  %v136_v15 = vld [vmem:[#allocation2 + $0x128] sm:$0xff]  ;;  %v137_v16 = vld [vmem:[#allocation2 + $0x130] sm:$0xff] }
  0x11   :  { %156 = vmatpush.msra.mxu1 %v141_v6  ;;  %v139_v11 = vld [vmem:[#allocation2 + $0x140] sm:$0xff]  ;;  %92 = vmatpush.msra.mxu0 %v67_v2  ;;  %v132_v17 = vld [vmem:[#allocation2 + $0x108] sm:$0xff]  ;;  %v133_v18 = vld [vmem:[#allocation2 + $0x110] sm:$0xff] }
  0x12   :  { %v65_v12 = vld [vmem:[%s621_s0] sm:$0xff]  ;;  %177 = vmatpush.msra.mxu2 %v139_v11  ;;  %197 = vmatpush.msra.mxu3 %v140_v13  ;;  %v134_v19 = vld [vmem:[#allocation2 + $0x118] sm:$0xff]  ;;  %v129_v20 = vld [vmem:[#allocation2 + $0xf0] sm:$0xff] }
  0x13   :  { %157 = vmatpush.msra.mxu1 %v138_v9  ;;  %v135_v14 = vld [vmem:[#allocation2 + $0x120] sm:$0xff]  ;;  %93 = vmatpush.msra.mxu0 %v66_v10  ;;  %v130_v21 = vld [vmem:[#allocation2 + $0xf8] sm:$0xff]  ;;  %v128_v25 = vld [vmem:[#allocation2 + $0xe8] sm:$0xff] }
  0x14   :  { %391 = vmatmul.msk.f32.vlgmr.msra.gmra.mxu0 %vm74_vm0, %v65_v12  ;;  %178 = vmatpush.msra.mxu2 %v136_v15  ;;  %v131_v22 = vld [vmem:[#allocation2 + $0x100] sm:$0xff]  ;;  %v126_v23 = vld [vmem:[#allocation2 + $0xd8] sm:$0xff]  ;;  %v124_v27 = vld [vmem:[#allocation2 + $0xc8] sm:$0xff] }
  0x15   :  { %158 = vmatpush.msra.mxu1 %v135_v14  ;;  %198 = vmatpush.msra.mxu3 %v137_v16  ;;  %v127_v24 = vld [vmem:[#allocation2 + $0xe0] sm:$0xff]  ;;  %v125_v28 = vld [vmem:[#allocation2 + $0xd0] sm:$0xff]  ;;  %v120_v29 = vld [vmem:[#allocation2 + $0xa8] sm:$0xff] }
  0x16   :  { %179 = vmatpush.msra.mxu2 %v133_v18  ;;  %v123_v26 = vld [vmem:[#allocation2 + $0xc0] sm:$0xff]  ;;  %v121_v30 = vld [vmem:[#allocation2 + $0xb0] sm:$0xff]  ;;  %v122_v31 = vld [vmem:[#allocation2 + $0xb8] sm:$0xff] }
  0x17   :  { %159 = vmatpush.msra.mxu1 %v132_v17  ;;  %199 = vmatpush.msra.mxu3 %v134_v19  ;;  %v117_v32 = vld [vmem:[#allocation2 + $0x90] sm:$0xff]  ;;  %v118_v33 = vld [vmem:[#allocation2 + $0x98] sm:$0xff]  ;;  %v119_v34 = vld [vmem:[#allocation2 + $0xa0] sm:$0xff] }
  0x18   :  { %180 = vmatpush.msra.mxu2 %v130_v21  ;;  %v114_v35 = vld [vmem:[#allocation2 + $0x78] sm:$0xff]  ;;  %v115_v36 = vld [vmem:[#allocation2 + $0x80] sm:$0xff]  ;;  %v116_v37 = vld [vmem:[#allocation2 + $0x88] sm:$0xff] }
  0x19   :  { %160 = vmatpush.msra.mxu1 %v129_v20  ;;  %200 = vmatpush.msra.mxu3 %v131_v22  ;;  %v111_v38 = vld [vmem:[#allocation2 + $0x60] sm:$0xff]  ;;  %v112_v39 = vld [vmem:[#allocation2 + $0x68] sm:$0xff]  ;;  %v113_v40 = vld [vmem:[#allocation2 + $0x70] sm:$0xff] }
  0x1a   :  { %181 = vmatpush.msra.mxu2 %v127_v24  ;;  %v108_v41 = vld [vmem:[#allocation2 + $0x48] sm:$0xff]  ;;  %v109_v42 = vld [vmem:[#allocation2 + $0x50] sm:$0xff]  ;;  %v110_v43 = vld [vmem:[#allocation2 + $0x58] sm:$0xff] }
  0x1b   :  { %161 = vmatpush.msra.mxu1 %v126_v23  ;;  %201 = vmatpush.msra.mxu3 %v128_v25  ;;  %v105_v44 = vld [vmem:[#allocation2 + $0x30] sm:$0xff]  ;;  %v106_v45 = vld [vmem:[#allocation2 + $0x38] sm:$0xff]  ;;  %v107_v46 = vld [vmem:[#allocation2 + $0x40] sm:$0xff] }
  0x1c   :  { %182 = vmatpush.msra.mxu2 %v124_v27  ;;  %v102_v47 = vld [vmem:[#allocation2 + $0x18] sm:$0xff]  ;;  %v103_v48 = vld [vmem:[#allocation2 + $0x20] sm:$0xff]  ;;  %v104_v49 = vld [vmem:[#allocation2 + $0x28] sm:$0xff] }
  0x1d   :  { %162 = vmatpush.msra.mxu1 %v123_v26  ;;  %202 = vmatpush.msra.mxu3 %v125_v28  ;;  %v99_v50 = vld [vmem:[#allocation2] sm:$0xff]  ;;  %v100_v51 = vld [vmem:[#allocation2 + $0x8] sm:$0xff]  ;;  %v101_v52 = vld [vmem:[#allocation2 + $0x10] sm:$0xff] }
  0x1e   :  { %183 = vmatpush.msra.mxu2 %v121_v30  ;;  %v233_v53 = vld [vmem:[#allocation5 + $0x78] sm:$0xff]  ;;  %v232_v54 = vld [vmem:[#allocation5 + $0x70] sm:$0xff]  ;;  %v231_v57 = vld [vmem:[#allocation5 + $0x68] sm:$0xff] }
  0x1f   :  { %163 = vmatpush.msra.mxu1 %v120_v29  ;;  %203 = vmatpush.msra.mxu3 %v122_v31  ;;  %v249_v55 = vld [vmem:[#allocation5 + $0xf8] sm:$0xff]  ;;  %v248_v58 = vld [vmem:[#allocation5 + $0xf0] sm:$0xff]  ;;  %v247_v60 = vld [vmem:[#allocation5 + $0xe8] sm:$0xff] }
  0x20   :  { %184 = vmatpush.msra.mxu2 %v118_v33  ;;  %270 = vmatpush.msrb.mxu0 %v233_v53  ;;  %v265_v56 = vld [vmem:[#allocation5 + $0x178] sm:$0xff]  ;;  %v264_v59 = vld [vmem:[#allocation5 + $0x170] sm:$0xff]  ;;  %v263_v61 = vld [vmem:[#allocation5 + $0x168] sm:$0xff] }
  0x21   :  { %164 = vmatpush.msra.mxu1 %v117_v32  ;;  %204 = vmatpush.msra.mxu3 %v119_v34  ;;  %v230_v62 = vld [vmem:[#allocation5 + $0x60] sm:$0xff]  ;;  %v229_v1 = vld [vmem:[#allocation5 + $0x58] sm:$0xff]  ;;  %v228_v4 = vld [vmem:[#allocation5 + $0x50] sm:$0xff] }
  0x22   :  { %185 = vmatpush.msra.mxu2 %v115_v36  ;;  %271 = vmatpush.msrb.mxu0 %v232_v54  ;;  %v246_v63 = vld [vmem:[#allocation5 + $0xe0] sm:$0xff]  ;;  %v245_v2 = vld [vmem:[#allocation5 + $0xd8] sm:$0xff]  ;;  %v244_v5 = vld [vmem:[#allocation5 + $0xd0] sm:$0xff] }
  0x23   :  { %165 = vmatpush.msra.mxu1 %v114_v35  ;;  %205 = vmatpush.msra.mxu3 %v116_v37  ;;  %v262_v0 = vld [vmem:[#allocation5 + $0x160] sm:$0xff]  ;;  %v261_v3 = vld [vmem:[#allocation5 + $0x158] sm:$0xff]  ;;  %v260_v6 = vld [vmem:[#allocation5 + $0x150] sm:$0xff] }
  0x24   :  { %186 = vmatpush.msra.mxu2 %v112_v39  ;;  %272 = vmatpush.msrb.mxu0 %v231_v57  ;;  %v227_v7 = vld [vmem:[#allocation5 + $0x48] sm:$0xff]  ;;  %v226_v10 = vld [vmem:[#allocation5 + $0x40] sm:$0xff]  ;;  %v225_v13 = vld [vmem:[#allocation5 + $0x38] sm:$0xff] }
  0x25   :  { %166 = vmatpush.msra.mxu1 %v111_v38  ;;  %206 = vmatpush.msra.mxu3 %v113_v40  ;;  %v243_v8 = vld [vmem:[#allocation5 + $0xc8] sm:$0xff]  ;;  %v242_v11 = vld [vmem:[#allocation5 + $0xc0] sm:$0xff]  ;;  %v241_v14 = vld [vmem:[#allocation5 + $0xb8] sm:$0xff] }
  0x26   :  { %187 = vmatpush.msra.mxu2 %v109_v42  ;;  %273 = vmatpush.msrb.mxu0 %v230_v62  ;;  %v259_v9 = vld [vmem:[#allocation5 + $0x148] sm:$0xff]  ;;  %v258_v12 = vld [vmem:[#allocation5 + $0x140] sm:$0xff]  ;;  %v257_v15 = vld [vmem:[#allocation5 + $0x138] sm:$0xff] }
  0x27   :  { %167 = vmatpush.msra.mxu1 %v108_v41  ;;  %207 = vmatpush.msra.mxu3 %v110_v43  ;;  %v224_v16 = vld [vmem:[#allocation5 + $0x30] sm:$0xff]  ;;  %v223_v19 = vld [vmem:[#allocation5 + $0x28] sm:$0xff]  ;;  %v222_v20 = vld [vmem:[#allocation5 + $0x20] sm:$0xff] }
  0x28   :  { %188 = vmatpush.msra.mxu2 %v106_v45  ;;  %274 = vmatpush.msrb.mxu0 %v229_v1  ;;  %v240_v17 = vld [vmem:[#allocation5 + $0xb0] sm:$0xff]  ;;  %v221_v21 = vld [vmem:[#allocation5 + $0x18] sm:$0xff]  ;;  %v399_v22 = vld [vmem:[%s623_s2] ss:$0 sm:$0xff] }
  0x29   :  { %168 = vmatpush.msra.mxu1 %v105_v44  ;;  %208 = vmatpush.msra.mxu3 %v107_v46  ;;  %v256_v18 = vld [vmem:[#allocation5 + $0x130] sm:$0xff]  ;;  %v239_v27 = vld [vmem:[#allocation5 + $0xa8] sm:$0xff]  ;;  %v238_v30 = vld [vmem:[#allocation5 + $0xa0] sm:$0xff] }
  0x2a   :  { %189 = vmatpush.msra.mxu2 %v103_v48  ;;  %275 = vmatpush.msrb.mxu0 %v228_v4  ;;  %v220_v26 = vld [vmem:[#allocation5 + $0x10] sm:$0xff]  ;;  %v255_v28 = vld [vmem:[#allocation5 + $0x128] sm:$0xff]  ;;  %v254_v31 = vld [vmem:[#allocation5 + $0x120] sm:$0xff] }
  0x2b   :  { %169 = vmatpush.msra.mxu1 %v102_v47  ;;  %209 = vmatpush.msra.mxu3 %v104_v49  ;;  %v219_v29 = vld [vmem:[#allocation5 + $0x8] sm:$0xff]  ;;  %v218_v32 = vld [vmem:[#allocation5] sm:$0xff]  ;;  %v237_v33 = vld [vmem:[#allocation5 + $0x98] sm:$0xff] }
  0x2c   :  { %190 = vmatpush.msra.mxu2 %v100_v51  ;;  %276 = vmatpush.msrb.mxu0 %v227_v7  ;;  %v253_v34 = vld [vmem:[#allocation5 + $0x118] sm:$0xff]  ;;  %v236_v35 = vld [vmem:[#allocation5 + $0x90] sm:$0xff]  ;;  %v235_v37 = vld [vmem:[#allocation5 + $0x88] sm:$0xff] }
  0x2d   :  { %170 = vmatpush.msra.mxu1 %v99_v50  ;;  %210 = vmatpush.msra.mxu3 %v101_v52  ;;  %v252_v36 = vld [vmem:[#allocation5 + $0x110] sm:$0xff]  ;;  %v251_v38 = vld [vmem:[#allocation5 + $0x108] sm:$0xff]  ;;  %v234_v39 = vld [vmem:[#allocation5 + $0x80] sm:$0xff] }
  0x2e   :  { %310 = vmatpush.msrb.mxu2 %v265_v56  ;;  %277 = vmatpush.msrb.mxu0 %v226_v10  ;;  %v250_v40 = vld [vmem:[#allocation5 + $0x100] sm:$0xff]  ;;  %v346_v41 = vld [vmem:[%s628_s7 + $0x78] sm:$0xff]  ;;  %v345_v42 = vld [vmem:[%s628_s7 + $0x70] sm:$0xff] }
  0x2f   :  { %290 = vmatpush.msrb.mxu1 %v249_v55  ;;  %351 = vmatpush.msrb.mxu3 %v346_v41  ;;  %v344_v43 = vld [vmem:[%s628_s7 + $0x68] sm:$0xff]  ;;  %v343_v44 = vld [vmem:[%s628_s7 + $0x60] sm:$0xff]  ;;  %v342_v45 = vld [vmem:[%s628_s7 + $0x58] sm:$0xff] }
  0x30   :  { %311 = vmatpush.msrb.mxu2 %v264_v59  ;;  %278 = vmatpush.msrb.mxu0 %v225_v13  ;;  %v341_v46 = vld [vmem:[%s628_s7 + $0x50] sm:$0xff]  ;;  %v340_v47 = vld [vmem:[%s628_s7 + $0x48] sm:$0xff]  ;;  %v147_v48 = vld [vmem:[%s625_s4] sm:$0x7] }
  0x31   :  { %291 = vmatpush.msrb.mxu1 %v248_v58  ;;  %352 = vmatpush.msrb.mxu3 %v345_v42  ;;  %v149_v49 = vperm.slane %v147_v48, 0  ;;  %v150_v53 = vperm.slane %v147_v48, 1  ;;  %v151_v54 = vperm.slane %v147_v48, 2  ;;  %v338_v62 = vld [vmem:[%s628_s7 + $0x38] sm:$0xff]  ;;  %v335_v1 = vld [vmem:[%s628_s7 + $0x20] sm:$0xff]  ;;  %v332_v4 = vld [vmem:[%s628_s7 + $0x8] sm:$0xff] }
  0x32   :  { %312 = vmatpush.msrb.mxu2 %v263_v61  ;;  %279 = vmatpush.msrb.mxu0 %v224_v16  ;;  %v339_v61 = vld [vmem:[%s628_s7 + $0x40] sm:$0xff] }
  0x33   :  { %292 = vmatpush.msrb.mxu1 %v247_v60  ;;  %353 = vmatpush.msrb.mxu3 %v344_v43 }
  0x34   :  { %313 = vmatpush.msrb.mxu2 %v262_v0  ;;  %280 = vmatpush.msrb.mxu0 %v223_v19  ;;  %v336_v0 = vld [vmem:[%s628_s7 + $0x28] sm:$0xff] }
  0x35   :  { %293 = vmatpush.msrb.mxu1 %v246_v63  ;;  %354 = vmatpush.msrb.mxu3 %v343_v44  ;;  %v337_v63 = vld [vmem:[%s628_s7 + $0x30] sm:$0xff] }
  0x36   :  { %314 = vmatpush.msrb.mxu2 %v261_v3  ;;  %281 = vmatpush.msrb.mxu0 %v222_v20  ;;  %v333_v3 = vld [vmem:[%s628_s7 + $0x10] sm:$0xff] }
  0x37   :  { %294 = vmatpush.msrb.mxu1 %v245_v2  ;;  %355 = vmatpush.msrb.mxu3 %v342_v45  ;;  %v334_v2 = vld [vmem:[%s628_s7 + $0x18] sm:$0xff] }
  0x38   :  { %315 = vmatpush.msrb.mxu2 %v260_v6  ;;  %282 = vmatpush.msrb.mxu0 %v221_v21  ;;  %v400_v6 = vld [vmem:[%s627_s6] ss:$0 sm:$0xff] }
  0x39   :  { %295 = vmatpush.msrb.mxu1 %v244_v5  ;;  %356 = vmatpush.msrb.mxu3 %v341_v46  ;;  %v331_v5 = vld [vmem:[%s628_s7] sm:$0xff] }
  0x3a   :  { %316 = vmatpush.msrb.mxu2 %v259_v9  ;;  %283 = vmatpush.msrb.mxu0 %v220_v26 }
  0x3b   :  { %296 = vmatpush.msrb.mxu1 %v243_v8  ;;  %357 = vmatpush.msrb.mxu3 %v340_v47 }
  0x3c   :  { %317 = vmatpush.msrb.mxu2 %v258_v12  ;;  %284 = vmatpush.msrb.mxu0 %v219_v29 }
  0x3d   :  { %297 = vmatpush.msrb.mxu1 %v242_v11  ;;  %358 = vmatpush.msrb.mxu3 %v339_v61 }
  0x3e   :  { %318 = vmatpush.msrb.mxu2 %v257_v15  ;;  %285 = vmatpush.msrb.mxu0 %v218_v32 }
  0x3f   :  { %298 = vmatpush.msrb.mxu1 %v241_v14  ;;  %359 = vmatpush.msrb.mxu3 %v338_v62  ;;  %v401_v14 = vld [vmem:[%s629_s8] ss:$0 sm:$0xff] }
  0x40   :  { %319 = vmatpush.msrb.mxu2 %v256_v18 }
  0x41   :  { %299 = vmatpush.msrb.mxu1 %v240_v17  ;;  %360 = vmatpush.msrb.mxu3 %v337_v63 }
  0x42   :  { %320 = vmatpush.msrb.mxu2 %v255_v28 }
  0x43   :  { %300 = vmatpush.msrb.mxu1 %v239_v27  ;;  %361 = vmatpush.msrb.mxu3 %v336_v0 }
  0x44   :  { %321 = vmatpush.msrb.mxu2 %v254_v31 }
  0x45   :  { %301 = vmatpush.msrb.mxu1 %v238_v30  ;;  %362 = vmatpush.msrb.mxu3 %v335_v1 }
  0x46   :  { %322 = vmatpush.msrb.mxu2 %v253_v34 }
  0x47   :  { %302 = vmatpush.msrb.mxu1 %v237_v33  ;;  %363 = vmatpush.msrb.mxu3 %v334_v2 }
  0x48   :  { %323 = vmatpush.msrb.mxu2 %v252_v36 }
  0x49   :  { %303 = vmatpush.msrb.mxu1 %v236_v35  ;;  %364 = vmatpush.msrb.mxu3 %v333_v3 }
  0x4a   :  { %324 = vmatpush.msrb.mxu2 %v251_v38 }
  0x4b   :  { %304 = vmatpush.msrb.mxu1 %v235_v37  ;;  %365 = vmatpush.msrb.mxu3 %v332_v4 }
  0x4c   :  { %325 = vmatpush.msrb.mxu2 %v250_v40 }
  0x4d   :  { %305 = vmatpush.msrb.mxu1 %v234_v39  ;;  %366 = vmatpush.msrb.mxu3 %v331_v5 }
  0x91   :  { %v95_v23 = vpop.f32.mrf.mxu0 }
  0x92   :  { %v96_v24 = vadd.f32 %v399_v22, %v95_v23 }
  0x94   :  { %v98_v25 = vmax.f32 %v96_v24, 0.0 }
  0x96   :  { %171 = vmatmul.f32.vlgmr.msra.gmra.mxu1 %v98_v25  ;;  %191 = vmatmul.f32.vlgmr.msra.gmra.mxu2 %v98_v25 }
  0x97   :  { %211 = vmatmul.f32.vlgmr.msra.gmra.mxu3 %v98_v25 }
 0x113   :  { %v172_v50 = vpop.f32.mrf.mxu1 }
 0x114   :  { %v173_v51 = vadd.f32 %v172_v50, %v149_v49 }
 0x116   :  { %v215_v52 = vmax.f32 %v173_v51, 0.0 }
 0x118   :  { %286 = vmatmul.f32.vlgmr.msrb.gmra.mxu0 %v215_v52 }
 0x119   :  { %v192_v55 = vpop.f32.mrf.mxu2 }
 0x11a   :  { %v193_v56 = vadd.f32 %v192_v55, %v150_v53  ;;  %v212_v57 = vpop.f32.mrf.mxu3 }
 0x11b   :  { %v213_v58 = vadd.f32 %v212_v57, %v151_v54 }
 0x11c   :  { %v216_v59 = vmax.f32 %v193_v56, 0.0 }
 0x11d   :  { %v217_v60 = vmax.f32 %v213_v58, 0.0 }
 0x11e   :  { %306 = vmatmul.f32.vlgmr.msrb.gmra.mxu1 %v216_v59 }
 0x11f   :  { %326 = vmatmul.f32.vlgmr.msrb.gmra.mxu2 %v217_v60 }
 0x195   :  { %v287_v7 = vpop.f32.mrf.mxu0 }
 0x196   :  { %v288_v9 = vadd.f32 %v400_v6, %v287_v7 }
 0x19b   :  { %v307_v8 = vpop.f32.mrf.mxu1 }
 0x19c   :  { %v308_v10 = vadd.f32 %v307_v8, %v288_v9 }
 0x1a2   :  { %v327_v11 = vpop.f32.mrf.mxu2 }
 0x1a3   :  { %v328_v12 = vadd.f32 %v327_v11, %v308_v10 }
 0x1a5   :  { %v330_v13 = vmax.f32 %v328_v12, 0.0 }
 0x1a7   :  { %367 = vmatmul.f32.vlgmr.msrb.gmra.mxu3 %v330_v13 }
 0x22a   :  { %v368_v15 = vpop.f32.mrf.mxu3 }
 0x22b   :  { %v369_v16 = vadd.f32 %v401_v14, %v368_v15 }
 0x22d   :  { %372 = vst.msk [vmem:[#allocation7] sm:$0xff] %vm371_vm1, %v369_v16 }
 0x22e   :  { %383 = dma.vmem_to_hbm [thread:$0]  %s379_s21, 128, %s381_s3, [#allocation4]  }
 0x22f   :  { %478 = dma.done.wait [#allocation4], 128  }
 0x230   :  { %479 = vsyncadd [#allocation4], 4294967168 }
 0x231   :  { %388 = vsyncpa [#allocation3], 1 }
 0x232   :  { %389 = vsyncpa [#allocation6], 1 }
 0x233   :  { %390 = vsyncpa [#allocation4], 1 }

</bundles_post_ra>
